<compile_context>
chip_gen: v5e
topology: v5e:2x2
jax: 0.10.0
libtpu: 0.0.40
codegen_flags: <defaults>
</compile_context>

<pallas_src>
import functools

import jax
import jax.numpy as jnp
from jax.experimental import pallas as pl
from jax.experimental.pallas import tpu as pltpu


def _round_up(v: int, m: int) -> int:
    return ((v + m - 1) // m) * m


def _add_pe_kernel(x_ref, pe_ref, o_ref, *, batch: int, d_model: int):
    """x_ref/o_ref: (TP, batch*d_model); pe_ref: (TP, d_model).

    Adds the PE block to each batch's d_model-wide lane slice using static slices
    (no large tiled intermediate is materialized in VMEM).
    """
    pe = pe_ref[...]
    for b in range(batch):
        sl = slice(b * d_model, (b + 1) * d_model)
        o_ref[:, sl] = (x_ref[:, sl] + pe).astype(o_ref.dtype)


def learned_positional_embeddings(x, pe, *, patch_tile=None, min_pallas_bytes=1 << 20):
    """x: [patches, batch, d_model]; pe: [max_len, 1, d_model]. Returns x + pe[:patches]."""
    patches, batch, d_model = x.shape
    max_len = pe.shape[0]
    assert max_len >= patches and pe.shape[1] == 1 and pe.shape[2] == d_model

    # Explicit precision choice: compute in the activation dtype (the learned PE
    # parameter normally shares it).
    pe = pe.astype(x.dtype)

    # Tiny problems: pallas_call launch + DMA setup dwarfs the work; let XLA fuse it.
    if x.size * x.dtype.itemsize < min_pallas_bytes:
        return x + pe[:patches]

    # Lane/sublane-dense views (pure reshapes of contiguous arrays -> no extra HBM pass):
    #   x2 : [patches, batch*d_model]   patch rows -> sublanes, batch*d_model -> lanes
    #   pe2: [max_len, d_model]
    x2 = x.reshape(patches, batch * d_model)
    pe2 = pe.reshape(max_len, d_model)

    # Patch-tile sizing: target ~2 MiB x-blocks so x/out double buffers + PE blocks
    # stay ~10 MiB, comfortably under the 16 MiB v5e scoped-VMEM default (and the
    # explicit 32 MiB limit below). TP must be a multiple of 8 for sublane tiling.
    if patch_tile is None:
        row_bytes = batch * d_model * x.dtype.itemsize
        target_block_bytes = 2 * 1024 * 1024
        patch_tile = min(max(1, target_block_bytes // row_bytes), patches)
    tp = _round_up(patch_tile, 8)
    # Ragged tail (patches % tp != 0): Pallas clips boundary-block DMAs; out-of-range
    # rows are garbage-in/dropped-on-write, which is safe for an elementwise add.
    grid = (pl.cdiv(patches, tp),)

    out2 = pl.pallas_call(
        functools.partial(_add_pe_kernel, batch=batch, d_model=d_model),
        out_shape=jax.ShapeDtypeStruct((patches, batch * d_model), x.dtype),
        grid_spec=pltpu.PrefetchScalarGridSpec(
            num_scalar_prefetch=0,
            grid=grid,
            in_specs=[
                pl.BlockSpec((tp, batch * d_model), lambda i: (i, 0)),
                pl.BlockSpec((tp, d_model), lambda i: (i, 0)),
            ],
            out_specs=pl.BlockSpec((tp, batch * d_model), lambda i: (i, 0)),
        ),
        # Elementwise add can reuse x's buffer for the output.
        input_output_aliases={0: 0},
        compiler_params=pltpu.CompilerParams(
            # Independent patch chunks -> shardable across the 2 TensorCores on v7x.
            dimension_semantics=("parallel",),
            # Explicit headroom: 32 MiB (v6e/v7x default; raises v5e's 16 MiB default,
            # well within physical VMEM on every generation).
            vmem_limit_bytes=32 * 1024 * 1024,
        ),
    )(x2, pe2)

    return out2.reshape(patches, batch, d_model)


if __name__ == "__main__":
    # Small shapes consistent with the module: x is [patches, batch, d_model].
    patches, batch, d_model, max_len = 40, 2, 32, 64

    key = jax.random.PRNGKey(0)
    kx, kpe = jax.random.split(key)
    x = jax.random.normal(kx, (patches, batch, d_model), dtype=jnp.float32)
    # The module initializes the parameter to zeros; use random values so the add
    # is actually exercised.
    pe = jax.random.normal(kpe, (max_len, 1, d_model), dtype=jnp.float32)

    # Reference computed before the (buffer-aliasing) kernel call.
    ref = x + pe[:patches]

    # Force the Pallas path (these toy sizes would otherwise dispatch to plain XLA)
    # and use a small patch tile so the grid has several steps plus a ragged tail.
    out = learned_positional_embeddings(x, pe, patch_tile=16, min_pallas_bytes=0)
    out = jax.block_until_ready(out)
    assert out.shape == (patches, batch, d_model)
    assert jnp.allclose(out, ref, atol=1e-6), "pallas path mismatch vs reference"

    # Default dispatch: tiny inputs take the fused-XLA path.
    out_small = jax.block_until_ready(learned_positional_embeddings(x, pe))
    assert jnp.allclose(out_small, ref, atol=1e-6), "xla path mismatch vs reference"

    print("KERNEL_OK")
</pallas_src>

<mosaic_0001>
module attributes {stable_mosaic.version = 11 : i64} {
  func.func @_add_pe_kernel(%arg0: i32, %arg1: memref<16x64xf32, #tpu.memory_space<vmem>>, %arg2: memref<16x32xf32, #tpu.memory_space<vmem>>, %arg3: memref<16x64xf32, #tpu.memory_space<vmem>>) attributes {dimension_semantics = [#tpu.dimension_semantics<parallel>], iteration_bounds = array<i64: 3>, scalar_prefetch = 0 : i64, scratch_operands = 0 : i64, tpu.core_type = #tpu.core_type<tc>, window_params = [{transform_indices = @transform_0, window_bounds = array<i64: 16, 64>}, {transform_indices = @transform_1, window_bounds = array<i64: 16, 32>}, {transform_indices = @transform_2, window_bounds = array<i64: 16, 64>}]} {
    %c0 = arith.constant 0 : index
    %c0_0 = arith.constant 0 : index
    %0 = vector.load %arg2[%c0, %c0_0] : memref<16x32xf32, #tpu.memory_space<vmem>>, vector<16x32xf32>
    %c0_1 = arith.constant 0 : index
    %c0_2 = arith.constant 0 : index
    %1 = vector.load %arg1[%c0_1, %c0_2] : memref<16x64xf32, #tpu.memory_space<vmem>>, vector<16x32xf32>
    %2 = arith.addf %1, %0 : vector<16x32xf32>
    %c0_3 = arith.constant 0 : index
    %c0_4 = arith.constant 0 : index
    %3 = vector.load %arg3[%c0_3, %c0_4] : memref<16x64xf32, #tpu.memory_space<vmem>>, vector<16x32xf32>
    tpu.vector_store %arg3[%c0_3, %c0_4], %2 {strides = array<i32>} : memref<16x64xf32, #tpu.memory_space<vmem>>, vector<16x32xf32>,
    %c0_5 = arith.constant 0 : index
    %c32 = arith.constant 32 : index
    %4 = vector.load %arg1[%c0_5, %c32] : memref<16x64xf32, #tpu.memory_space<vmem>>, vector<16x32xf32>
    %5 = arith.addf %4, %0 : vector<16x32xf32>
    %c0_6 = arith.constant 0 : index
    %c32_7 = arith.constant 32 : index
    %6 = vector.load %arg3[%c0_6, %c32_7] : memref<16x64xf32, #tpu.memory_space<vmem>>, vector<16x32xf32>
    tpu.vector_store %arg3[%c0_6, %c32_7], %5 {strides = array<i32>} : memref<16x64xf32, #tpu.memory_space<vmem>>, vector<16x32xf32>,
    return
  }
  func.func @transform_0(%arg0: i32) -> (i32, i32) {
    %c0_i32 = arith.constant 0 : i32
    %c0_i32_0 = arith.constant 0 : i32
    return %arg0, %c0_i32 : i32, i32
  }
  func.func @transform_1(%arg0: i32) -> (i32, i32) {
    %c0_i32 = arith.constant 0 : i32
    %c0_i32_0 = arith.constant 0 : i32
    return %arg0, %c0_i32 : i32, i32
  }
  func.func @transform_2(%arg0: i32) -> (i32, i32) {
    %c0_i32 = arith.constant 0 : i32
    %c0_i32_0 = arith.constant 0 : i32
    return %arg0, %c0_i32 : i32, i32
  }
}

</mosaic_0001>

<bundles_post_ra>
// kernel: tpu_custom_call.1
= control target key start
LH: loop header
LB: loop body
LE: loop exit
PB: predicated region body
PF: predicated region fallthrough
CT: control target
= control target key end

     0   :  { %7 = vsyncpa [#allocation3], 0  ;;  %s723_s0 = inlined_call_operand.hbm [shape: f32[40,64], index: 0, kind: input, shape index: {}, may-alias: {0,2}]   ;;  %s724_s1 = inlined_call_operand.vmem [shape: f32[64,32], index: 1, kind: input, shape index: {}]   ;;  %s725_s2 = inlined_call_operand.hbm [shape: f32[40,64], index: 2, kind: output, shape index: {}, may-alias: {0,2}]  }
   0x1   :  { %9 = vsyncpa [#allocation3 + $0x1], 0 }
   0x2   :  { %10 = vsyncpa [#allocation4], 0 }
   0x3   :  { %12 = vsyncpa [#allocation4 + $0x1], 0  ;;  %s545_s9 = smov 0   ;;  %s547_s10 = smov 0  }
   0x4   :  { %s549_s11 = smov 0   ;;  %s551_s12 = smov 0  }
   0x5 LB: > { %s566_s13 = sadd.s32 4294967295, %s521_s12   ;;  %s335_s14 = sadd.s32 4294967294, %s521_s12   ;;  %s521_s12 = sphi %s551_s12, %s734_s12   ;;  %s517_s11 = sphi %s549_s11, %s733_s11   ;;  %s513_s10 = sphi %s547_s10, %s732_s10   ;;  %s509_s9 = sphi %s545_s9, %s731_s9  }
   0x6   : > { %s570_s15 = sadd.s32 1, %s521_s12   ;;  %s25_s16 = sadd.s32 1, %s517_s11 }
   0x7   : > { %s22_s17 = ssub.s32 %s521_s12, %s570_s15  ;;  %p32_p0 = scmp.ne.s32.totalorder %s517_s11, %s513_s10 }
   0x8   : > { %p23_p1 = scmp.eq.s32.totalorder %s22_s17, 0  ;;  %p33_p2 = scmp.eq.s32.totalorder %s521_s12, 0 }
   0x9   : > { %p38_p3 = scmp.ne.s32.totalorder %s513_s10, %s509_s9  ;;  %p39_p4 = scmp.eq.s32.totalorder %s566_s13, 0 }
   0xa   : > { %s582_s18 = scalar_select %p23_p1, %s517_s11, %s25_s16  }
   0xb   : > { %p34_p5 = por %p33_p2, %p32_p0  ;;  %p584_p6 = por %p39_p4, %p38_p3 }
   0xc   : > { %p88_p7 = scmp.eq.s32.totalorder %s566_s13, 2  ;;  %p94_p8 = scmp.eq.s32.totalorder %s335_s14, 2 }
   0xd   : > { %p337_p11 = scmp.ge.s32.totalorder %s521_s12, 3 }
   0xe   : > { %p589_p9 = por %p88_p7, %p32_p0  ;;  %p593_p10 = por %p94_p8, %p38_p3 }
   0xf   : > { %110 = sbr.rel (%p337_p11) target bundleno = 56 (0x38), region = 16 }
  0x14   : > { %113 = sbr.rel (!%p34_p5) target bundleno = 56 (0x38), region = 20  ;;  %s114_s22 = sand.u32 (%p34_p5), 1, %s517_s11  }
  0x15   : > { %s339_s23 = sshll.u32 (%p34_p5), %s521_s12, 1  ;;  %s338_s24 = sshll.u32 (%p34_p5), %s114_s22, 4 }
  0x16   : > { %s120_s25 = ssub.s32 (%p34_p5), 5, %s339_s23  ;;  %s603_s29 = scalar_lea.sflag (%p34_p5), [#allocation3], %s114_s22 }
  0x17   : > { %p121_p12 = scmp.lt.s32.totalorder (%p34_p5), %s120_s25, 2  ;;  %s118_s30 = scalar_lea.vmem (%p34_p5), [#allocation2], %s338_s24 }
  0x19   : > { %s736_s25 = smov (!%p121_p12, %s120_s25), 2 }
  0x1a   : > { %s340_s26 = sshll.u32 %s736_s25, 3 }
  0x1b   : > { %s124_s27 = ssub.s32 16, %s340_s26 }
  0x1c   : > { %s125_s28 = sshll.u32 %s124_s27, 4 }
  0x1d   : > { %126 = vsyncadd %s603_s29, %s125_s28  ;;  %p606_p13 = scmp.ne.s32.totalorder %s340_s26, 0  ;;  %s359_s4 = sshll.u32 %s521_s12, 4 }
  0x1e   : > { %s129_s7 = scalar_lea.hbm %s723_s0, %s359_s4  ;;  %s614_s8 = sshll.u32 %s118_s30, 4  ;;  %s134_s8 = int_to_ptr.vmem [resolvable:$true] %s614_s8 }
  0x1f   : > { %s131_s14 = sshll.u32 %s129_s7, 4  ;;  %s344_s16 = sshll.u32 %s736_s25, 7  ;;  %s617_s14 = int_to_ptr.hbm [resolvable:$true] %s131_s14 }
  0x20   : > { %s405_s17 = sshra.s32 %s617_s14, 4  ;;  %s407_s22 = sshrl.u32 %s344_s16, 4  ;;  %s406_s17 = int_to_ptr.hbm [resolvable:$true] %s405_s17 }
  0x21   : > { %s412_s23 = scalar_lea.hbm %s406_s17, %s407_s22  ;;  %s416_s27 = scalar_lea.hbm %s723_s0, 40 }
  0x22   : > { %p413_p0 = scmp.ne.s32.totalorder %s406_s17, %s412_s23  ;;  %p417_p3 = scmp.lt.s32.totalorder %s406_s17, %s723_s0 }
  0x23   : > { %p418_p4 = scmp.lt.s32.totalorder %s416_s27, %s412_s23 }
  0x24   : > { %p414_p1 = pnand %p413_p0, %p606_p13 }
  0x25   : > { %p419_p5 = por %p418_p4, %p417_p3 }
  0x26   : > { %p415_p2 = pneg %p414_p1 }
  0x28   : > { %p420_p7 = pnand %p419_p5, %p415_p2 }
  0x2a   : > { %423 = shalt.err (!%p420_p7)
}
  0x2b   : > { %s424_s4 = sshra.s32 %s134_s8, 4  ;;  %s523_s6 = smov [#allocation2]   ;;  %s425_s4 = int_to_ptr.vmem [resolvable:$true] %s424_s4 }
  0x2c   : > { %s431_s5 = scalar_lea.vmem %s425_s4, %s407_s22  ;;  %s435_s7 = scalar_lea.vmem %s523_s6, 32 }
  0x2d   : > { %p432_p8 = scmp.ne.s32.totalorder %s425_s4, %s431_s5  ;;  %p437_p0 = scmp.lt.s32.totalorder %s435_s7, %s431_s5 }
  0x2f   : > { %p433_p11 = pnand %p432_p8, %p606_p13 }
  0x31   : > { %p434_p12 = pneg %p433_p11 }
  0x33   : > { %p439_p1 = pnand %p437_p0, %p434_p12 }
  0x35   : > { %442 = shalt.err (!%p439_p1)
}
  0x36   : > { %s524_s17 = smov 128   ;;  %s525_s23 = smov 8  }
  0x37   : > { %139 = dma.hbm_to_vmem [thread:$0]  (%p606_p13), %s617_s14, %s344_s16, %s134_s8, %s603_s29, %s524_s17, %s524_s17, %s525_s23  }
  0x38 PF: > { %p345_p2 = scmp.ge.s32.totalorder %s521_s12, 1  ;;  %p150_p3 = scmp.lt.s32.totalorder %s521_s12, 4 }
  0x3a   : > { %p151_p4 = pnand %p345_p2, %p150_p3 }
  0x3b   : > { %s646_s22 = sand.u32 (!%p151_p4), 1, %s513_s10  }
  0x3c   : > { %154 = sbr.rel (%p151_p4) target bundleno = 231 (0xe7), region = 28  ;;  %s346_s24 = sshll.u32 (!%p151_p4), %s646_s22, 4 }
  0x3d   : > { %s157_s26 = scalar_lea.sflag (!%p151_p4), [#allocation3], %s646_s22  ;;  %s160_s3 = scalar_lea.vmem (!%p151_p4), [#allocation2], %s346_s24 }
  0x41   : > { %500 = dma.done.wait (%p584_p6), %s157_s26, 256  }
  0x42   : > { %502 = vsyncadd (%p584_p6), %s157_s26, 4294967040  ;;  %s655_s25 = sshll.u32 %s566_s13, 1  ;;  %v205_v1 = vld [vmem:[%s160_s3] sm:$0xff]  ;;  %vm209_vm0 = vcmask 261120   ;;  %s526_s28 = smov 32   ;;  %v206_v4 = vld [vmem:[%s160_s3 + $0x8] sm:$0xff] }
  0x43   : > { %p193_p13 = scmp.lt.s32.totalorder %s655_s25, 7  ;;  %s186_s19 = scalar_lea.vmem [#allocation5], %s346_s24  ;;  %vm224_vm1 = vcmask 523520  }
  0x44   : > { %s228_s30 = scalar_lea.sflag [#allocation4], %s646_s22  ;;  %s236_s4 = ssub.s32 (%p589_p9), 5, %s655_s25 }
  0x45   : > { %s194_s29 = scalar_select %p193_p13, %s655_s25, 7 }
  0x46   : > { %p237_p6 = scmp.lt.s32.totalorder (%p589_p9), %s236_s4, 2 }
  0x47   : > { %s349_s8 = sshll.u32 %s194_s29, 3 }
  0x48   : > { %s196_s27 = scalar_lea.vmem %s724_s1, %s349_s8 }
  0x49   : > { %v203_v0 = vld [vmem:[%s196_s27] sm:$0xff]  ;;  %v204_v3 = vld [vmem:[%s196_s27 + $0x8] sm:$0xff] }
  0x4a   : > { %216 = vrot.lane.b32.xlu0 %v203_v0, %s526_s28  ;;  %v207_v2 = vadd.f32 %v205_v1, %v203_v0  ;;  %v208_v5 = vadd.f32 %v206_v4, %v204_v3 }
  0x4c   : > { %210 = vst.msk [vmem:[%s186_s19] sm:$0xff] %vm209_vm0, %v207_v2 }
  0x4d   : > { %211 = vst.msk [vmem:[%s186_s19 + $0x8] sm:$0xff] %vm209_vm0, %v208_v5 }
  0x52   : > { %218 = vrot.lane.b32.xlu0 %v204_v3, %s526_s28 }
  0xbc   : > { %v217_v6 = vpop.permute.xlu0 %216 }
  0xbd   : > { %v222_v7 = vadd.f32 %v217_v6, %v205_v1 }
  0xbf   : > { %225 = vst.msk [vmem:[%s186_s19] sm:$0xff] %vm224_vm1, %v222_v7 }
  0xc3   : > { %234 = sbr.rel (!%p589_p9) target bundleno = 231 (0xe7), region = 36 }
  0xc4   : > { %v219_v8 = vpop.permute.xlu0 %218 }
  0xc5   : > { %v223_v9 = vadd.f32 %v219_v8, %v206_v4 }
  0xc7   : > { %226 = vst.msk [vmem:[%s186_s19 + $0x8] sm:$0xff] %vm224_vm1, %v223_v9 }
  0xc8   : > { %s738_s4 = smov (!%p237_p6, %s236_s4), 2 }
  0xc9   : > { %s352_s5 = sshll.u32 %s738_s4, 3 }
  0xca   : > { %s240_s6 = ssub.s32 16, %s352_s5 }
  0xcb   : > { %s241_s7 = sshll.u32 %s240_s6, 4 }
  0xcc   : > { %242 = vsyncadd %s228_s30, %s241_s7  ;;  %p671_p5 = scmp.ne.s32.totalorder %s352_s5, 0  ;;  %s360_s20 = sshll.u32 %s566_s13, 4 }
  0xcd   : > { %s245_s26 = scalar_lea.hbm %s725_s2, %s360_s20  ;;  %s247_s3 = sshll.u32 %s186_s19, 4  ;;  %s679_s3 = int_to_ptr.vmem [resolvable:$true] %s247_s3 }
  0xce   : > { %s249_s25 = sshll.u32 %s245_s26, 4  ;;  %s356_s29 = sshll.u32 %s738_s4, 7  ;;  %s681_s25 = int_to_ptr.hbm [resolvable:$true] %s249_s25 }
  0xcf   : > { %s444_s8 = sshra.s32 %s679_s3, 4  ;;  %s446_s14 = sshrl.u32 %s356_s29, 4  ;;  %s445_s8 = int_to_ptr.vmem [resolvable:$true] %s444_s8 }
  0xd0   : > { %s451_s16 = scalar_lea.vmem %s445_s8, %s446_s14  ;;  %s527_s13 = smov [#allocation5]  }
  0xd1   : > { %p452_p9 = scmp.ne.s32.totalorder %s445_s8, %s451_s16  ;;  %s455_s27 = scalar_lea.vmem %s527_s13, 32 }
  0xd2   : > { %p457_p11 = scmp.lt.s32.totalorder %s455_s27, %s451_s16 }
  0xd3   : > { %p453_p7 = pnand %p452_p9, %p671_p5 }
  0xd5   : > { %p454_p8 = pneg %p453_p7 }
  0xd7   : > { %p459_p12 = pnand %p457_p11, %p454_p8 }
  0xd9   : > { %462 = shalt.err (!%p459_p12)
}
  0xda   : > { %s463_s28 = sshra.s32 %s681_s25, 4  ;;  %s474_s7 = scalar_lea.hbm %s725_s2, 40  ;;  %s464_s28 = int_to_ptr.hbm [resolvable:$true] %s463_s28 }
  0xdb   : > { %s470_s19 = scalar_lea.hbm %s464_s28, %s446_s14  ;;  %p475_p3 = scmp.lt.s32.totalorder %s464_s28, %s725_s2 }
  0xdc   : > { %p471_p0 = scmp.ne.s32.totalorder %s464_s28, %s470_s19  ;;  %p476_p4 = scmp.lt.s32.totalorder %s474_s7, %s470_s19 }
  0xde   : > { %p472_p1 = pnand %p471_p0, %p671_p5  ;;  %p477_p13 = por %p476_p4, %p475_p3 }
  0xe0   : > { %p473_p2 = pneg %p472_p1 }
  0xe2   : > { %p478_p6 = pnand %p477_p13, %p473_p2 }
  0xe4   : > { %481 = shalt.err (!%p478_p6)
}
  0xe5   : > { %s528_s24 = smov 128   ;;  %s529_s26 = smov 8  }
  0xe6   : > { %255 = dma.vmem_to_hbm [thread:$0]  (%p671_p5), %s679_s3, %s356_s29, %s681_s25, %s228_s30, %s528_s24, %s528_s24, %s529_s26  }
  0xe7 PF: > { %p367_p9 = scmp.ge.s32.totalorder %s521_s12, 2  ;;  %s264_s8 = sand.u32 1, %s509_s9  }
  0xe8   : > { %s265_s14 = scalar_lea.sflag [#allocation4], %s264_s8 }
  0xe9   : > { %p364_p7 = pnand %p367_p9, %p593_p10 }
  0xeb   : > { %p365_p8 = pneg %p364_p7 }
  0xed   : > { %504 = dma.done.wait (%p365_p8), %s265_s14, 256  }
  0xee   : > { %506 = vsyncadd (%p365_p8), %s265_s14, 4294967040  ;;  %p15_p11 = scmp.ge.s32.totalorder %s570_s15, 5   ;;  %s731_s9 = smov %s513_s10 }
  0xef   : > { %s732_s10 = smov %s517_s11  ;;  %s733_s11 = smov %s582_s18 }
  0xf0   : > { %s734_s12 = smov %s570_s15  ;;  %17 = sbr.rel (!%p15_p11) target bundleno = 5 (0x5), region = 76 }
  0xf5   :  { %271 = vsyncpa [#allocation3], 1 }
  0xf6   :  { %273 = vsyncpa [#allocation3 + $0x1], 1 }
  0xf7   :  { %274 = vsyncpa [#allocation4], 1 }
  0xf8   :  { %276 = vsyncpa [#allocation4 + $0x1], 1 }

</bundles_post_ra>
